<compile_context>
chip_gen: v5e
topology: v5e:2x2
jax: 0.10.0
libtpu: 0.0.40
codegen_flags: <defaults>
</compile_context>

<pallas_src>
import jax
import jax.numpy as jnp
from jax.experimental import pallas as pl
from jax.experimental.pallas import tpu as pltpu


def _cart2gps_kernel(c_ref, o_ref):
    # c_ref: (3, tile_rows, 128) VMEM block, component-major, fully dense slabs.
    # o_ref: (2, tile_rows, 128) VMEM block: [0] = lat, [1] = lon.
    x = c_ref[0].astype(jnp.float32)
    y = c_ref[1].astype(jnp.float32)
    z = c_ref[2].astype(jnp.float32)
    # arcsin(z) == atan2(z, sqrt(1 - z^2)) for |z| <= 1 (NaN otherwise, matching torch).
    lat = jnp.arctan2(z, jnp.sqrt(1.0 - z * z))
    lon = jnp.arctan2(y, x)
    o_ref[0] = lat.astype(o_ref.dtype)
    o_ref[1] = lon.astype(o_ref.dtype)


def cartesian_to_gps(cartesian: jax.Array, *, max_tile_rows: int = 2048) -> jax.Array:
    """Pallas TPU implementation of CartesiantoGPS.forward: (N, 3) -> (N, 2) [lat, lon]."""
    n, c = cartesian.shape
    assert c == 3, "expected (N, 3) cartesian input"
    out_dtype = cartesian.dtype

    # Pad only up to the next multiple of 128 points (lane width); zeros map to
    # lat = lon = 0 and are sliced off at the end.
    n_pad = pl.cdiv(n, 128) * 128
    if n_pad != n:
        cartesian = jnp.pad(cartesian, ((0, n_pad - n), (0, 0)))
    n_rows = n_pad // 128

    # Component-major, (rows, 128) dense view: (3, n_rows, 128). The transpose is
    # the only wrapper-side layout pass on the input; the reshape is free.
    cm = cartesian.T.reshape(3, n_rows, 128)

    # Tile: sublane-aligned (multiple of 8 rows, or the full extent for tiny inputs),
    # capped at 2048 rows (~10.5 MiB double-buffered in+out), and sized so the grid
    # has >= 2 steps when possible (v7x has two TensorCores).
    if n_rows <= 8:
        tile_rows = n_rows
    else:
        tile_rows = min(max_tile_rows, ((pl.cdiv(n_rows, 2) + 7) // 8) * 8)
    grid = (pl.cdiv(n_rows, tile_rows),)

    out = pl.pallas_call(
        _cart2gps_kernel,
        out_shape=jax.ShapeDtypeStruct((2, n_rows, 128), out_dtype),
        grid=grid,
        in_specs=[pl.BlockSpec((3, tile_rows, 128), lambda i: (0, i, 0))],
        out_specs=pl.BlockSpec((2, tile_rows, 128), lambda i: (0, i, 0)),
        compiler_params=pltpu.CompilerParams(
            dimension_semantics=("parallel",),
        ),
        cost_estimate=pl.CostEstimate(
            flops=60 * n_pad,            # ~polynomial/select work of two atan2 per point
            transcendentals=3 * n_pad,   # 2x atan2 + 1x sqrt per point
            bytes_accessed=(3 + 2) * n_pad * 4,
        ),
    )(cm)

    # (2, n_rows, 128) -> (2, n_pad) -> drop padding -> (N, 2) to match the module.
    return out.reshape(2, n_pad)[:, :n].T


def _reference(cartesian: jax.Array) -> jax.Array:
    x = cartesian[:, 0]
    y = cartesian[:, 1]
    z = cartesian[:, 2]
    lat = jnp.arcsin(z)
    lon = jnp.arctan2(y, x)
    return jnp.stack([lat, lon], axis=-1)


if __name__ == "__main__":
    key = jax.random.PRNGKey(0)

    # Small shape, deliberately not a multiple of 128 to exercise the pad path.
    n1 = 200
    raw1 = jax.random.normal(key, (n1, 3), dtype=jnp.float32)
    cart1 = raw1 / jnp.linalg.norm(raw1, axis=-1, keepdims=True)  # unit sphere -> |z| <= 1
    out1 = jax.block_until_ready(cartesian_to_gps(cart1))
    ref1 = _reference(cart1)
    assert out1.shape == (n1, 2)
    assert jnp.allclose(out1, ref1, atol=1e-5, rtol=1e-5), "mismatch vs reference (n=200)"

    # Slightly larger shape to exercise a multi-step grid with a partial tail block.
    n2 = 1200
    raw2 = jax.random.normal(jax.random.PRNGKey(1), (n2, 3), dtype=jnp.float32)
    cart2 = raw2 / jnp.linalg.norm(raw2, axis=-1, keepdims=True)
    out2 = jax.block_until_ready(cartesian_to_gps(cart2))
    ref2 = _reference(cart2)
    assert out2.shape == (n2, 2)
    assert jnp.allclose(out2, ref2, atol=1e-5, rtol=1e-5), "mismatch vs reference (n=1200)"

    print("KERNEL_OK")
</pallas_src>

<mosaic_0001>
module attributes {stable_mosaic.version = 11 : i64} {
  func.func @_cart2gps_kernel(%arg0: i32, %arg1: memref<3x2x128xf32, #tpu.memory_space<vmem>>, %arg2: memref<2x2x128xf32, #tpu.memory_space<vmem>>) attributes {dimension_semantics = [#tpu.dimension_semantics<parallel>], iteration_bounds = array<i64: 1>, scalar_prefetch = 0 : i64, scratch_operands = 0 : i64, tpu.core_type = #tpu.core_type<tc>, window_params = [{transform_indices = @transform_0, window_bounds = array<i64: 3, 2, 128>}, {transform_indices = @transform_1, window_bounds = array<i64: 2, 2, 128>}]} {
    %c0 = arith.constant 0 : index
    %c0_0 = arith.constant 0 : index
    %c0_1 = arith.constant 0 : index
    %0 = vector.load %arg1[%c0, %c0_0, %c0_1] : memref<3x2x128xf32, #tpu.memory_space<vmem>>, vector<1x2x128xf32>
    %1 = vector.shape_cast %0 : vector<1x2x128xf32> to vector<2x128xf32>
    %c1 = arith.constant 1 : index
    %c0_2 = arith.constant 0 : index
    %c0_3 = arith.constant 0 : index
    %2 = vector.load %arg1[%c1, %c0_2, %c0_3] : memref<3x2x128xf32, #tpu.memory_space<vmem>>, vector<1x2x128xf32>
    %3 = vector.shape_cast %2 : vector<1x2x128xf32> to vector<2x128xf32>
    %c2 = arith.constant 2 : index
    %c0_4 = arith.constant 0 : index
    %c0_5 = arith.constant 0 : index
    %4 = vector.load %arg1[%c2, %c0_4, %c0_5] : memref<3x2x128xf32, #tpu.memory_space<vmem>>, vector<1x2x128xf32>
    %5 = vector.shape_cast %4 : vector<1x2x128xf32> to vector<2x128xf32>
    %6 = arith.mulf %5, %5 : vector<2x128xf32>
    %cst = arith.constant 1.000000e+00 : f32
    %7 = vector.broadcast %cst : f32 to vector<2x128xf32>
    %8 = arith.subf %7, %6 : vector<2x128xf32>
    %9 = math.sqrt %8 : vector<2x128xf32>
    %10 = math.atan2 %5, %9 : vector<2x128xf32>
    %11 = math.atan2 %3, %1 : vector<2x128xf32>
    %c0_6 = arith.constant 0 : index
    %c0_7 = arith.constant 0 : index
    %c0_8 = arith.constant 0 : index
    %12 = vector.load %arg2[%c0_6, %c0_7, %c0_8] : memref<2x2x128xf32, #tpu.memory_space<vmem>>, vector<1x2x128xf32>
    %13 = vector.shape_cast %12 : vector<1x2x128xf32> to vector<2x128xf32>
    %14 = vector.shape_cast %10 : vector<2x128xf32> to vector<1x2x128xf32>
    tpu.vector_store %arg2[%c0_6, %c0_7, %c0_8], %14 {strides = array<i32>} : memref<2x2x128xf32, #tpu.memory_space<vmem>>, vector<1x2x128xf32>,
    %c1_9 = arith.constant 1 : index
    %c0_10 = arith.constant 0 : index
    %c0_11 = arith.constant 0 : index
    %15 = vector.load %arg2[%c1_9, %c0_10, %c0_11] : memref<2x2x128xf32, #tpu.memory_space<vmem>>, vector<1x2x128xf32>
    %16 = vector.shape_cast %15 : vector<1x2x128xf32> to vector<2x128xf32>
    %17 = vector.shape_cast %11 : vector<2x128xf32> to vector<1x2x128xf32>
    tpu.vector_store %arg2[%c1_9, %c0_10, %c0_11], %17 {strides = array<i32>} : memref<2x2x128xf32, #tpu.memory_space<vmem>>, vector<1x2x128xf32>,
    return
  }
  func.func @transform_0(%arg0: i32) -> (i32, i32, i32) {
    %c0_i32 = arith.constant 0 : i32
    %c0_i32_0 = arith.constant 0 : i32
    %c0_i32_1 = arith.constant 0 : i32
    return %c0_i32, %arg0, %c0_i32_0 : i32, i32, i32
  }
  func.func @transform_1(%arg0: i32) -> (i32, i32, i32) {
    %c0_i32 = arith.constant 0 : i32
    %c0_i32_0 = arith.constant 0 : i32
    %c0_i32_1 = arith.constant 0 : i32
    return %c0_i32, %arg0, %c0_i32_0 : i32, i32, i32
  }
}

</mosaic_0001>

<bundles_post_ra>
// kernel: tpu_custom_call.1
= control target key start
LH: loop header
LB: loop body
LE: loop exit
PB: predicated region body
PF: predicated region fallthrough
CT: control target
= control target key end

     0   :  { %6 = vsyncpa [#allocation3], 0  ;;  %s350_s0 = inlined_call_operand.hbm [shape: f32[3,2,128], index: 0, kind: input, shape index: {}]   ;;  %s351_s1 = inlined_call_operand.hbm [shape: f32[2,2,128], index: 1, kind: output, shape index: {}]  }
   0x1   :  { %7 = vsyncpa [#allocation4], 0  ;;  %s12_s8 = sshll.u32 %s350_s0, 4  ;;  %s250_s9 = smov [#allocation2]   ;;  %s13_s8 = int_to_ptr.hbm [resolvable:$true] %s12_s8 }
   0x2   :  { %s14_s10 = sshll.u32 %s250_s9, 4  ;;  %s251_s11 = smov 32   ;;  %s15_s10 = int_to_ptr.vmem [resolvable:$true] %s14_s10 }
   0x3   :  { %s252_s12 = smov 2  }
   0x4   :  { %20 = dma.hbm_to_vmem [thread:$0]  %s13_s8, 96, %s15_s10, [#allocation3], %s251_s11, %s251_s11, %s252_s12  }
   0x5   :  { %246 = dma.done.wait [#allocation3], 96  }
   0x6   :  { %247 = vsyncadd [#allocation3], 4294967200  ;;  %v272_v0 = vld [vmem:[#allocation2 + $0x4] sm:$0x3]  ;;  %v274_v1 = vld [vmem:[#allocation2] sm:$0x3] }
   0x7   :  { %v276_v2 = vld [vmem:[#allocation2 + $0x2] sm:$0x3]  ;;  %v30_v3 = vmul.f32 %v272_v0, %v272_v0  ;;  %v281_v4 = vand.u32 2147483647, %v274_v1  ;;  %v291_v29 = vand.u32 2147483647, %v272_v0  ;;  %vm92_vm11 = vcmp.ne.f32.partialorder %v272_v0, %v272_v0 }
   0x8   :  { %v284_v5 = vand.u32 2147483647, %v276_v2  ;;  %s255_s0 = smov [#allocation5]   ;;  %s173_s16 = sshll.u32 %s351_s1, 4  ;;  %s174_s16 = int_to_ptr.hbm [resolvable:$true] %s173_s16 }
   0x9   :  { %v31_v6 = vsub.f32 1.0, %v30_v3  ;;  %vm98_vm14 = vcmp.eq.s32.totalorder %v291_v29, inf  ;;  %s171_s13 = sshll.u32 %s255_s0, 4  ;;  %s172_s13 = int_to_ptr.vmem [resolvable:$true] %s171_s13 }
   0xa   :  { %v107_v7 = vmax.f32 %v281_v4, %v284_v5  ;;  %v106_v20 = vmin.f32 %v281_v4, %v284_v5 }
   0xb   :  { %192 = vrsqrt.f32 %v31_v6  ;;  %vm39_vm4 = vcmp.eq.f32.partialorder %v31_v6, inf  ;;  %v42_v23 = vand.u32 2147483648, %v31_v6  ;;  %vm41_vm5 = vcmp.eq.f32.partialorder %v31_v6, 0.0 }
   0xc   :  { %194 = vrcp.f32 %v107_v7  ;;  %v119_v13 = vand.u32 2147483648, %v107_v7  ;;  %vm113_vm0 = vweird.f32 %v107_v7  ;;  %v117_v15 = vand.u32 2147483647, %v107_v7 }
   0xe   :  { %v120_v19 = vor.u32 1.1754944e-38, %v119_v13  ;;  %vm118_vm3 = vcmp.eq.f32.partialorder %v117_v15, 8.507059e+37 }
  0x11   :  { %v193_v8 = vpop.eup %192 }
  0x12   :  { %v195_v9 = vpop.eup %194  ;;  %v33_v10 = vmul.f32 %v193_v8, %v31_v6 }
  0x13   :  { %v109_v11 = vmul.f32 %v195_v9, %v107_v7  ;;  %vm114_vm1 = vweird.f32 %v195_v9 }
  0x14   :  { %v34_v12 = vmul.f32 %v193_v8, %v33_v10  ;;  %vm115_vm2 = vmor %vm113_vm0, %vm114_vm1  ;;  %vm141_vm0 = vcmp.gt.f32.partialorder %v284_v5, %v281_v4  ;;  %vm147_vm1 = vcmp.lt.s32.totalorder %v274_v1, 0 }
  0x15   :  { %v110_v14 = vsub.f32 1.0, %v109_v11 }
  0x16   :  { %v35_v16 = vmul.f32 0.5, %v34_v12 }
  0x17   :  { %v111_v17 = vmul.f32 %v195_v9, %v110_v14 }
  0x18   :  { %v36_v18 = vsub.f32 1.5, %v35_v16 }
  0x19   :  { %v112_v21 = vadd.f32 %v195_v9, %v111_v17  ;;  %v253_v17 = vmov 0.0  }
  0x1a   :  { %v37_v22 = vmul.f32 %v193_v8, %v36_v18  ;;  %v148_v18 = vsel %vm147_vm1, 3.1415927, %v253_v17 }
  0x1b   :  { %v116_v24 = vsel %vm115_vm2, %v195_v9, %v112_v21  ;;  %vm151_vm2 = vcmp.ne.f32.partialorder %v274_v1, %v274_v1 }
  0x1c   :  { %v38_v25 = vmul.f32 %v37_v22, %v31_v6  ;;  %v121_v26 = vsel %vm118_vm3, %v120_v19, %v116_v24  ;;  %vm152_vm3 = vcmp.ne.f32.partialorder %v276_v2, %v276_v2 }
  0x1d   :  { %v122_v27 = vmul.f32 %v121_v26, %v106_v20 }
  0x1e   :  { %v40_v28 = vsel %vm39_vm4, %v31_v6, %v38_v25  ;;  %vm323_vm4 = vmor %vm151_vm2, %vm152_vm3 }
  0x1f   :  { %v293_v30 = vsel %vm41_vm5, %v42_v23, %v40_v28  ;;  %v123_v31 = vmul.f32 %v122_v27, %v122_v27  ;;  %vm157_vm5 = vcmp.eq.s32.totalorder %v281_v4, inf  ;;  %v254_v23 = vmov 0.7853982  }
  0x20   :  { %v296_v32 = vand.u32 2147483647, %v293_v30  ;;  %vm91_vm10 = vcmp.ne.f32.partialorder %v293_v30, %v293_v30 }
  0x21   :  { %v124_v33 = vmul.f32 0.002785687, %v123_v31  ;;  %vm306_vm12 = vmor %vm91_vm10, %vm92_vm11  ;;  %vm87_vm11 = vcmp.lt.s32.totalorder %v293_v30, 0 }
  0x22   :  { %v47_v34 = vmax.f32 %v296_v32, %v291_v29  ;;  %v46_v49 = vmin.f32 %v296_v32, %v291_v29  ;;  %vm97_vm13 = vcmp.eq.s32.totalorder %v296_v32, inf  ;;  %vm81_vm10 = vcmp.gt.f32.partialorder %v291_v29, %v296_v32 }
  0x23   :  { %v125_v35 = vadd.f32 -0.015866, %v124_v33  ;;  %vm312_vm15 = vmand %vm97_vm13, %vm98_vm14  ;;  %vm84_vm13 = vcmp.lt.f32.partialorder %v293_v30, 0.0  ;;  %vm89_vm14 = vcmp.eq.f32.partialorder %v272_v0, 0.0 }
  0x24   :  { %196 = vrcp.f32 %v47_v34  ;;  %vm53_vm6 = vweird.f32 %v47_v34  ;;  %v59_v42 = vand.u32 2147483648, %v47_v34  ;;  %v57_v44 = vand.u32 2147483647, %v47_v34 }
  0x25   :  { %v126_v36 = vmul.f32 %v125_v35, %v123_v31 }
  0x26   :  { %v60_v48 = vor.u32 1.1754944e-38, %v59_v42  ;;  %vm58_vm9 = vcmp.eq.f32.partialorder %v57_v44, 8.507059e+37 }
  0x27   :  { %v127_v37 = vadd.f32 0.04247222, %v126_v36 }
  0x29   :  { %v128_v38 = vmul.f32 %v127_v37, %v123_v31 }
  0x2a   :  { %v197_v39 = vpop.eup %196 }
  0x2b   :  { %v49_v40 = vmul.f32 %v197_v39, %v47_v34  ;;  %v129_v41 = vadd.f32 -0.074975304, %v128_v38  ;;  %vm54_vm7 = vweird.f32 %v197_v39 }
  0x2c   :  { %vm55_vm8 = vmor %vm53_vm6, %vm54_vm7  ;;  %vm158_vm6 = vcmp.eq.s32.totalorder %v284_v5, inf  ;;  %vm144_vm7 = vcmp.lt.f32.partialorder %v274_v1, 0.0  ;;  %v162_v5 = vand.u32 2147483648, %v276_v2 }
  0x2d   :  { %v50_v43 = vsub.f32 1.0, %v49_v40  ;;  %v130_v45 = vmul.f32 %v129_v41, %v123_v31  ;;  %v156_v24 = vsel %vm144_vm7, 2.3561945, %v254_v23  ;;  %v88_v41 = vsel %vm87_vm11, 3.1415927, %v253_v17 }
  0x2f   :  { %v51_v46 = vmul.f32 %v197_v39, %v50_v43  ;;  %v131_v47 = vadd.f32 0.1064488, %v130_v45  ;;  %v96_v43 = vsel %vm84_vm13, 2.3561945, %v254_v23 }
  0x31   :  { %v52_v50 = vadd.f32 %v197_v39, %v51_v46  ;;  %v132_v51 = vmul.f32 %v131_v47, %v123_v31  ;;  %v102_v46 = vand.u32 2147483648, %v272_v0 }
  0x33   :  { %v56_v52 = vsel %vm55_vm8, %v197_v39, %v52_v50  ;;  %v133_v53 = vadd.f32 -0.14207031, %v132_v51  ;;  %vm159_vm8 = vmand %vm157_vm5, %vm158_vm6 }
  0x34   :  { %v61_v54 = vsel %vm58_vm9, %v60_v48, %v56_v52  ;;  %vm149_vm9 = vcmp.eq.f32.partialorder %v276_v2, 0.0 }
  0x35   :  { %v62_v55 = vmul.f32 %v61_v54, %v46_v49  ;;  %v134_v56 = vmul.f32 %v133_v53, %v123_v31 }
  0x37   :  { %v63_v57 = vmul.f32 %v62_v55, %v62_v55  ;;  %v135_v58 = vadd.f32 0.19993454, %v134_v56 }
  0x39   :  { %v64_v59 = vmul.f32 0.002785687, %v63_v57  ;;  %v136_v60 = vmul.f32 %v135_v58, %v123_v31 }
  0x3b   :  { %v65_v61 = vadd.f32 -0.015866, %v64_v59  ;;  %v137_v62 = vadd.f32 -0.33333147, %v136_v60 }
  0x3d   :  { %v66_v63 = vmul.f32 %v65_v61, %v63_v57  ;;  %v138_v3 = vmul.f32 %v137_v62, %v123_v31 }
  0x3f   :  { %v67_v6 = vadd.f32 0.04247222, %v66_v63  ;;  %v139_v7 = vmul.f32 %v138_v3, %v122_v27 }
  0x41   :  { %v68_v8 = vmul.f32 %v67_v6, %v63_v57  ;;  %v140_v11 = vadd.f32 %v139_v7, %v122_v27 }
  0x43   :  { %v69_v12 = vadd.f32 -0.074975304, %v68_v8  ;;  %v142_v13 = vsub.f32 1.5707964, %v140_v11 }
  0x45   :  { %v70_v14 = vmul.f32 %v69_v12, %v63_v57  ;;  %v143_v16 = vsel %vm141_vm0, %v142_v13, %v140_v11 }
  0x46   :  { %v145_v20 = vsub.f32 3.1415927, %v143_v16 }
  0x47   :  { %v71_v19 = vadd.f32 0.1064488, %v70_v14 }
  0x48   :  { %v146_v22 = vsel %vm144_vm7, %v145_v20, %v143_v16 }
  0x49   :  { %v72_v21 = vmul.f32 %v71_v19, %v63_v57  ;;  %v150_v25 = vsel %vm149_vm9, %v148_v18, %v146_v22 }
  0x4a   :  { %v154_v4 = vsel %vm323_vm4, nan, %v150_v25 }
  0x4b   :  { %v73_v26 = vadd.f32 -0.14207031, %v72_v21  ;;  %v160_v27 = vsel %vm159_vm8, %v156_v24, %v154_v4 }
  0x4c   :  { %v161_v28 = vand.u32 2147483647, %v160_v27 }
  0x4d   :  { %v74_v1 = vmul.f32 %v73_v26, %v63_v57 }
  0x4e   :  { %v163_v33 = vor.u32 %v162_v5, %v161_v28 }
  0x4f   :  { %v75_v31 = vadd.f32 0.19993454, %v74_v1 }
  0x50   :  { %166 = vst [vmem:[#allocation5 + $0x2] sm:$0x3] %v163_v33 }
  0x51   :  { %v76_v34 = vmul.f32 %v75_v31, %v63_v57 }
  0x53   :  { %v77_v35 = vadd.f32 -0.33333147, %v76_v34 }
  0x55   :  { %v78_v36 = vmul.f32 %v77_v35, %v63_v57 }
  0x57   :  { %v79_v37 = vmul.f32 %v78_v36, %v62_v55 }
  0x59   :  { %v80_v38 = vadd.f32 %v79_v37, %v62_v55 }
  0x5b   :  { %v82_v39 = vsub.f32 1.5707964, %v80_v38 }
  0x5d   :  { %v83_v40 = vsel %vm81_vm10, %v82_v39, %v80_v38 }
  0x5e   :  { %v85_v2 = vsub.f32 3.1415927, %v83_v40 }
  0x60   :  { %v86_v42 = vsel %vm84_vm13, %v85_v2, %v83_v40 }
  0x61   :  { %v90_v44 = vsel %vm89_vm14, %v88_v41, %v86_v42 }
  0x62   :  { %v94_v45 = vsel %vm306_vm12, nan, %v90_v44 }
  0x63   :  { %v100_v29 = vsel %vm312_vm15, %v96_v43, %v94_v45 }
  0x64   :  { %v101_v30 = vand.u32 2147483647, %v100_v29 }
  0x66   :  { %v103_v32 = vor.u32 %v102_v46, %v101_v30 }
  0x68   :  { %164 = vst [vmem:[#allocation5] sm:$0x3] %v103_v32 }
  0x69   :  { %179 = dma.vmem_to_hbm [thread:$0]  %s172_s13, 64, %s174_s16, [#allocation4], %s251_s11, %s251_s11, %s252_s12  }
  0x6a   :  { %248 = dma.done.wait [#allocation4], 64  }
  0x6b   :  { %249 = vsyncadd [#allocation4], 4294967232 }
  0x6c   :  { %184 = vsyncpa [#allocation3], 1 }
  0x6d   :  { %185 = vsyncpa [#allocation4], 1 }

</bundles_post_ra>
